<compile_context>
chip_gen: v7x
topology: tpu7x:2x2x1
jax: 0.10.0
libtpu: 0.0.40
codegen_flags: <defaults>
</compile_context>

<pallas_src>
import functools

import jax
import jax.numpy as jnp
from jax.experimental import pallas as pl
from jax.experimental.pallas import tpu as pltpu


def _gat_fused_kernel(x_ref, xt_ref, mask_ref, wbig_ref, watgt_ref, bias_ref,
                      out_ref, *, num_heads, f_out, identity_skip):
    tile_n = out_ref.shape[0]          # query rows handled by this grid step
    n_full = x_ref.shape[0]            # total number of nodes (keys)
    hf = num_heads * f_out
    score_off = hf if identity_skip else 2 * hf
    row0 = pl.program_id(0) * tile_n

    x_full = x_ref[...]                # (N, F_in) bf16

    # Single wide MXU matmul: [per-head projections | (skip proj) | W@a_src].
    # (Redundant across row tiles, but tiny compared with the attention matmuls.)
    big = jnp.dot(x_full, wbig_ref[...],
                  preferred_element_type=jnp.float32)          # (N, C) f32

    proj_bf = big[:, :hf].astype(jnp.bfloat16)                 # keys/values (N, HF)

    # Target scores, already transposed: (H, F_in) @ (F_in, N) -> (H, N).
    # MXU op instead of an in-kernel XLU transpose of an (N, H) slab.
    s_tgt_t = jnp.dot(watgt_ref[...], xt_ref[...],
                      preferred_element_type=jnp.float32)      # (H, N) f32

    # Rows belonging to this query tile.
    if tile_n == n_full:
        big_tile = big
    else:
        big_tile = jax.lax.dynamic_slice_in_dim(big, row0, tile_n, axis=0)

    s_src = big_tile[:, score_off:score_off + num_heads]       # (TN, H)

    if identity_skip:
        # F_in == F_out: skip is just "+ x" per head (no matmul, no weight DMA).
        x_tile = (x_full if tile_n == n_full
                  else jax.lax.dynamic_slice_in_dim(x_full, row0, tile_n, axis=0))
        skip = jnp.tile(x_tile.astype(jnp.float32), (1, num_heads))
    else:
        skip = big_tile[:, hf:2 * hf]                          # (TN, HF) f32

    mask = mask_ref[...]                                       # (TN, N) f32

    head_outs = []
    for h in range(num_heads):         # H is small & static -> unrolled
        scores = s_src[:, h:h + 1] + s_tgt_t[h:h + 1, :]       # (TN, N)
        scores = jnp.where(scores > 0, scores, 0.2 * scores)   # LeakyReLU(0.2)
        scores = scores + mask                                 # connectivity mask
        m = jnp.max(scores, axis=-1, keepdims=True)            # stable softmax
        e = jnp.exp(scores - m)
        denom = jnp.sum(e, axis=-1, keepdims=True)
        attn = e * pl.reciprocal(denom, approx=True)           # EUP, not VPU div
        head_outs.append(
            jnp.dot(attn.astype(jnp.bfloat16),
                    proj_bf[:, h * f_out:(h + 1) * f_out],
                    preferred_element_type=jnp.float32))       # (TN, F_out)

    out = jnp.concatenate(head_outs, axis=-1) + skip + bias_ref[...]
    # ELU(alpha=1) — written with exp()-1 for a guaranteed Mosaic lowering.
    out = jnp.where(out > 0.0, out, jnp.exp(jnp.minimum(out, 0.0)) - 1.0)
    out_ref[...] = out.astype(out_ref.dtype)                   # lane-dense store


def gat_layer_imp1(x, mask, proj_param, a_src, a_tgt, skip_w, bias):
    """x: (N, F_in); mask: (N, N); proj_param/skip_w: (H, F_in, F_out);
    a_src/a_tgt: (H, 1, F_out); bias: (H*F_out,).  Returns ((N, H*F_out), mask)."""
    H, F_in, F_out = proj_param.shape
    N = x.shape[0]
    HF = H * F_out

    identity_skip = (F_in == F_out)

    # Fused weight matrix: [W_heads | skip_proj (optional) | W@a_src].
    w_cat = jnp.transpose(proj_param, (1, 0, 2)).reshape(F_in, HF)
    a_src_col = jnp.einsum('hfo,ho->fh', proj_param, a_src[:, 0, :])   # (F_in, H)
    cols = [w_cat]
    if not identity_skip:
        cols.append(jnp.transpose(skip_w, (1, 0, 2)).reshape(F_in, HF))
    cols.append(a_src_col)
    w_big = jnp.concatenate(cols, axis=1).astype(jnp.bfloat16)         # (F_in, C)
    n_cols = w_big.shape[1]

    # Folded target-score weights, pre-transposed: row h = (W_h @ a_tgt_h)^T.
    wa_tgt_t = jnp.einsum('hfo,ho->hf', proj_param,
                          a_tgt[:, 0, :]).astype(jnp.bfloat16)         # (H, F_in)

    x_bf = x.astype(jnp.bfloat16)              # bf16 MXU operands, f32 accumulate
    x_t_bf = jnp.transpose(x_bf)               # (F_in, N) for the s_tgt matmul
    mask_f32 = mask.astype(jnp.float32)
    bias_row = bias.reshape(1, HF).astype(jnp.float32)

    # Row (query) tiling so mask/scores stay within VMEM for large graphs
    # and the grid axis can be shared across TensorCores.
    tile_n = N if N <= 512 else 256
    num_tiles = pl.cdiv(N, tile_n)

    kernel = functools.partial(_gat_fused_kernel, num_heads=H, f_out=F_out,
                               identity_skip=identity_skip)

    out = pl.pallas_call(
        kernel,
        out_shape=jax.ShapeDtypeStruct((N, HF), jnp.float32),
        grid_spec=pltpu.PrefetchScalarGridSpec(
            num_scalar_prefetch=0,
            grid=(num_tiles,),
            in_specs=[
                pl.BlockSpec((N, F_in), lambda i: (0, 0)),       # x (all nodes)
                pl.BlockSpec((F_in, N), lambda i: (0, 0)),       # x^T (all nodes)
                pl.BlockSpec((tile_n, N), lambda i: (i, 0)),     # mask row tile
                pl.BlockSpec((F_in, n_cols), lambda i: (0, 0)),  # fused weights
                pl.BlockSpec((H, F_in), lambda i: (0, 0)),       # (W@a_tgt)^T
                pl.BlockSpec((1, HF), lambda i: (0, 0)),         # bias row
            ],
            out_specs=pl.BlockSpec((tile_n, HF), lambda i: (i, 0)),
        ),
        compiler_params=pltpu.CompilerParams(
            dimension_semantics=("parallel",),
            vmem_limit_bytes=48 * 1024 * 1024),
    )(x_bf, x_t_bf, mask_f32, w_big, wa_tgt_t, bias_row)

    return out, mask


def _reference(x, mask, proj_param, a_src, a_tgt, skip_w, bias):
    """Pure-JAX f32 mirror of the PyTorch forward (eval mode)."""
    proj = jnp.einsum('nf,hfo->hno', x, proj_param)                  # (H,N,F_out)
    s_src = jnp.einsum('hno,ho->hn', proj, a_src[:, 0, :])[..., None]
    s_tgt = jnp.einsum('hno,ho->hn', proj, a_tgt[:, 0, :])[..., None]
    scores = s_src + jnp.transpose(s_tgt, (0, 2, 1))
    scores = jnp.where(scores > 0, scores, 0.2 * scores) + mask[None]
    attn = jax.nn.softmax(scores, axis=-1)
    out = jnp.einsum('hnm,hmo->hno', attn, proj)
    if x.shape[-1] == proj_param.shape[-1]:
        out = out + x[None]
    else:
        out = out + jnp.einsum('nf,hfo->hno', x, skip_w)
    out = jnp.transpose(out, (1, 0, 2)).reshape(x.shape[0], -1)
    out = out + bias.reshape(-1)
    return jax.nn.elu(out)


def _xavier_uniform(key, shape, fan_in, fan_out):
    limit = (6.0 / (fan_in + fan_out)) ** 0.5
    return jax.random.uniform(key, shape, jnp.float32, -limit, limit)


if __name__ == "__main__":
    # Small shapes consistent with the module: N nodes, F_in -> H heads x F_out.
    N, F_IN, F_OUT, H = 8, 16, 32, 4

    key = jax.random.PRNGKey(0)
    k_x, k_adj, k_proj, k_src, k_tgt, k_skip, k_bias = jax.random.split(key, 7)

    x = jax.random.normal(k_x, (N, F_IN), jnp.float32)

    # Connectivity mask: 0 where an edge exists, large negative otherwise.
    adj = (jax.random.uniform(k_adj, (N, N)) < 0.5) | jnp.eye(N, dtype=bool)
    mask = jnp.where(adj, 0.0, -1e9).astype(jnp.float32)

    # Deterministic parameter init (Xavier/Glorot uniform).
    proj_param = _xavier_uniform(k_proj, (H, F_IN, F_OUT),
                                 F_IN * F_OUT, H * F_OUT)
    a_src = _xavier_uniform(k_src, (H, 1, F_OUT), H, F_OUT)   # scoring_fn_source
    a_tgt = _xavier_uniform(k_tgt, (H, 1, F_OUT), H, F_OUT)   # scoring_fn_target
    # Module inits bias to zeros; use a small deterministic bias here so the
    # bias-add path is actually exercised by the check.
    bias = 0.1 * jax.random.normal(k_bias, (H * F_OUT,), jnp.float32)
    # skip_proj: Linear(F_IN, H*F_OUT, bias=False), per-head reshaped weight.
    skip_w = _xavier_uniform(k_skip, (H, F_IN, F_OUT), F_IN, H * F_OUT)

    out, mask_out = jax.jit(gat_layer_imp1)(x, mask, proj_param, a_src, a_tgt,
                                            skip_w, bias)
    jax.block_until_ready(out)

    ref = _reference(x, mask, proj_param, a_src, a_tgt, skip_w, bias)
    assert out.shape == (N, H * F_OUT)
    # bf16 MXU operands + approx reciprocal vs. pure-f32 reference -> loosened tol.
    assert jnp.allclose(out, ref, rtol=5e-2, atol=5e-2), "mismatch vs reference"
    assert jnp.array_equal(mask_out, mask)

    print("KERNEL_OK")
</pallas_src>

<mosaic_0001>
module attributes {stable_mosaic.version = 11 : i64} {
  func.func @_gat_fused_kernel(%arg0: i32, %arg1: memref<8x16xbf16, #tpu.memory_space<vmem>>, %arg2: memref<16x8xbf16, #tpu.memory_space<vmem>>, %arg3: memref<8x8xf32, #tpu.memory_space<vmem>>, %arg4: memref<16x260xbf16, #tpu.memory_space<vmem>>, %arg5: memref<4x16xbf16, #tpu.memory_space<vmem>>, %arg6: memref<1x128xf32, #tpu.memory_space<vmem>>, %arg7: memref<8x128xf32, #tpu.memory_space<vmem>>) attributes {dimension_semantics = [#tpu.dimension_semantics<parallel>], iteration_bounds = array<i64: 1>, scalar_prefetch = 0 : i64, scratch_operands = 0 : i64, tpu.core_type = #tpu.core_type<tc>, window_params = [{pipeline_mode = #tpu.pipeline_mode<synchronous>, transform_indices = @transform_0, window_bounds = array<i64: 8, 16>}, {pipeline_mode = #tpu.pipeline_mode<synchronous>, transform_indices = @transform_1, window_bounds = array<i64: 16, 8>}, {transform_indices = @transform_2, window_bounds = array<i64: 8, 8>}, {pipeline_mode = #tpu.pipeline_mode<synchronous>, transform_indices = @transform_3, window_bounds = array<i64: 16, 260>}, {pipeline_mode = #tpu.pipeline_mode<synchronous>, transform_indices = @transform_4, window_bounds = array<i64: 4, 16>}, {pipeline_mode = #tpu.pipeline_mode<synchronous>, transform_indices = @transform_5, window_bounds = array<i64: 1, 128>}, {transform_indices = @transform_6, window_bounds = array<i64: 8, 128>}]} {
    %c0 = arith.constant 0 : index
    %c0_0 = arith.constant 0 : index
    %0 = vector.load %arg1[%c0, %c0_0] : memref<8x16xbf16, #tpu.memory_space<vmem>>, vector<8x16xbf16>
    %c0_1 = arith.constant 0 : index
    %c0_2 = arith.constant 0 : index
    %1 = vector.load %arg4[%c0_1, %c0_2] : memref<16x260xbf16, #tpu.memory_space<vmem>>, vector<16x260xbf16>
    %cst = arith.constant dense<0.000000e+00> : vector<8x260xf32>
    %2 = tpu.matmul %0, %1, %cst {dimension_numbers = #tpu.dot_dimension_numbers<[1], [0], [0], [1], [0, 0, 1, 1], [], []>} : vector<8x16xbf16>, vector<16x260xbf16>, vector<8x260xf32> -> vector<8x260xf32>
    %3 = vector.extract_strided_slice %2 {offsets = [0, 0], sizes = [8, 128], strides = [1, 1]} : vector<8x260xf32> to vector<8x128xf32>
    %4 = arith.truncf %3 : vector<8x128xf32> to vector<8x128xbf16>
    %c0_3 = arith.constant 0 : index
    %c0_4 = arith.constant 0 : index
    %5 = vector.load %arg5[%c0_3, %c0_4] : memref<4x16xbf16, #tpu.memory_space<vmem>>, vector<4x16xbf16>
    %c0_5 = arith.constant 0 : index
    %c0_6 = arith.constant 0 : index
    %6 = vector.load %arg2[%c0_5, %c0_6] : memref<16x8xbf16, #tpu.memory_space<vmem>>, vector<16x8xbf16>
    %cst_7 = arith.constant dense<0.000000e+00> : vector<4x8xf32>
    %7 = tpu.matmul %5, %6, %cst_7 {dimension_numbers = #tpu.dot_dimension_numbers<[1], [0], [0], [1], [0, 0, 1, 1], [], []>} : vector<4x16xbf16>, vector<16x8xbf16>, vector<4x8xf32> -> vector<4x8xf32>
    %8 = vector.extract_strided_slice %2 {offsets = [0, 256], sizes = [8, 4], strides = [1, 1]} : vector<8x260xf32> to vector<8x4xf32>
    %9 = vector.extract_strided_slice %2 {offsets = [0, 128], sizes = [8, 128], strides = [1, 1]} : vector<8x260xf32> to vector<8x128xf32>
    %c0_8 = arith.constant 0 : index
    %c0_9 = arith.constant 0 : index
    %10 = vector.load %arg3[%c0_8, %c0_9] : memref<8x8xf32, #tpu.memory_space<vmem>>, vector<8x8xf32>
    %11 = vector.extract_strided_slice %8 {offsets = [0, 0], sizes = [8, 1], strides = [1, 1]} : vector<8x4xf32> to vector<8x1xf32>
    %12 = vector.extract_strided_slice %7 {offsets = [0, 0], sizes = [1, 8], strides = [1, 1]} : vector<4x8xf32> to vector<1x8xf32>
    %13 = vector.broadcast %11 : vector<8x1xf32> to vector<8x8xf32>
    %14 = vector.broadcast %12 : vector<1x8xf32> to vector<8x8xf32>
    %15 = arith.addf %13, %14 : vector<8x8xf32>
    %cst_10 = arith.constant 0.000000e+00 : f32
    %16 = vector.broadcast %cst_10 : f32 to vector<8x8xf32>
    %17 = arith.cmpf ogt, %15, %16 : vector<8x8xf32>
    %cst_11 = arith.constant 2.000000e-01 : f32
    %18 = vector.broadcast %cst_11 : f32 to vector<8x8xf32>
    %19 = arith.mulf %18, %15 : vector<8x8xf32>
    %20 = arith.select %17, %15, %19 : vector<8x8xi1>, vector<8x8xf32>
    %21 = arith.addf %20, %10 : vector<8x8xf32>
    %cst_12 = arith.constant dense<0xFF800000> : vector<8xf32>
    %22 = vector.multi_reduction <maximumf>, %21, %cst_12 [1] : vector<8x8xf32> to vector<8xf32>
    %23 = vector.shape_cast %22 : vector<8xf32> to vector<8x1xf32>
    %24 = vector.broadcast %23 : vector<8x1xf32> to vector<8x8xf32>
    %25 = arith.subf %21, %24 : vector<8x8xf32>
    %26 = math.exp %25 : vector<8x8xf32>
    %cst_13 = arith.constant dense<0.000000e+00> : vector<8xf32>
    %27 = vector.multi_reduction <add>, %26, %cst_13 [1] : vector<8x8xf32> to vector<8xf32>
    %28 = vector.shape_cast %27 : vector<8xf32> to vector<8x1xf32>
    %29 = tpu.reciprocal %28 {approx = true} : vector<8x1xf32> -> vector<8x1xf32>
    %30 = vector.broadcast %29 : vector<8x1xf32> to vector<8x8xf32>
    %31 = arith.mulf %26, %30 : vector<8x8xf32>
    %32 = arith.truncf %31 : vector<8x8xf32> to vector<8x8xbf16>
    %33 = vector.extract_strided_slice %4 {offsets = [0, 0], sizes = [8, 32], strides = [1, 1]} : vector<8x128xbf16> to vector<8x32xbf16>
    %cst_14 = arith.constant dense<0.000000e+00> : vector<8x32xf32>
    %34 = tpu.matmul %32, %33, %cst_14 {dimension_numbers = #tpu.dot_dimension_numbers<[1], [0], [0], [1], [0, 0, 1, 1], [], []>} : vector<8x8xbf16>, vector<8x32xbf16>, vector<8x32xf32> -> vector<8x32xf32>
    %35 = vector.extract_strided_slice %8 {offsets = [0, 1], sizes = [8, 1], strides = [1, 1]} : vector<8x4xf32> to vector<8x1xf32>
    %36 = vector.extract_strided_slice %7 {offsets = [1, 0], sizes = [1, 8], strides = [1, 1]} : vector<4x8xf32> to vector<1x8xf32>
    %37 = vector.broadcast %35 : vector<8x1xf32> to vector<8x8xf32>
    %38 = vector.broadcast %36 : vector<1x8xf32> to vector<8x8xf32>
    %39 = arith.addf %37, %38 : vector<8x8xf32>
    %cst_15 = arith.constant 0.000000e+00 : f32
    %40 = vector.broadcast %cst_15 : f32 to vector<8x8xf32>
    %41 = arith.cmpf ogt, %39, %40 : vector<8x8xf32>
    %cst_16 = arith.constant 2.000000e-01 : f32
    %42 = vector.broadcast %cst_16 : f32 to vector<8x8xf32>
    %43 = arith.mulf %42, %39 : vector<8x8xf32>
    %44 = arith.select %41, %39, %43 : vector<8x8xi1>, vector<8x8xf32>
    %45 = arith.addf %44, %10 : vector<8x8xf32>
    %cst_17 = arith.constant dense<0xFF800000> : vector<8xf32>
    %46 = vector.multi_reduction <maximumf>, %45, %cst_17 [1] : vector<8x8xf32> to vector<8xf32>
    %47 = vector.shape_cast %46 : vector<8xf32> to vector<8x1xf32>
    %48 = vector.broadcast %47 : vector<8x1xf32> to vector<8x8xf32>
    %49 = arith.subf %45, %48 : vector<8x8xf32>
    %50 = math.exp %49 : vector<8x8xf32>
    %cst_18 = arith.constant dense<0.000000e+00> : vector<8xf32>
    %51 = vector.multi_reduction <add>, %50, %cst_18 [1] : vector<8x8xf32> to vector<8xf32>
    %52 = vector.shape_cast %51 : vector<8xf32> to vector<8x1xf32>
    %53 = tpu.reciprocal %52 {approx = true} : vector<8x1xf32> -> vector<8x1xf32>
    %54 = vector.broadcast %53 : vector<8x1xf32> to vector<8x8xf32>
    %55 = arith.mulf %50, %54 : vector<8x8xf32>
    %56 = arith.truncf %55 : vector<8x8xf32> to vector<8x8xbf16>
    %57 = vector.extract_strided_slice %4 {offsets = [0, 32], sizes = [8, 32], strides = [1, 1]} : vector<8x128xbf16> to vector<8x32xbf16>
    %cst_19 = arith.constant dense<0.000000e+00> : vector<8x32xf32>
    %58 = tpu.matmul %56, %57, %cst_19 {dimension_numbers = #tpu.dot_dimension_numbers<[1], [0], [0], [1], [0, 0, 1, 1], [], []>} : vector<8x8xbf16>, vector<8x32xbf16>, vector<8x32xf32> -> vector<8x32xf32>
    %59 = vector.extract_strided_slice %8 {offsets = [0, 2], sizes = [8, 1], strides = [1, 1]} : vector<8x4xf32> to vector<8x1xf32>
    %60 = vector.extract_strided_slice %7 {offsets = [2, 0], sizes = [1, 8], strides = [1, 1]} : vector<4x8xf32> to vector<1x8xf32>
    %61 = vector.broadcast %59 : vector<8x1xf32> to vector<8x8xf32>
    %62 = vector.broadcast %60 : vector<1x8xf32> to vector<8x8xf32>
    %63 = arith.addf %61, %62 : vector<8x8xf32>
    %cst_20 = arith.constant 0.000000e+00 : f32
    %64 = vector.broadcast %cst_20 : f32 to vector<8x8xf32>
    %65 = arith.cmpf ogt, %63, %64 : vector<8x8xf32>
    %cst_21 = arith.constant 2.000000e-01 : f32
    %66 = vector.broadcast %cst_21 : f32 to vector<8x8xf32>
    %67 = arith.mulf %66, %63 : vector<8x8xf32>
    %68 = arith.select %65, %63, %67 : vector<8x8xi1>, vector<8x8xf32>
    %69 = arith.addf %68, %10 : vector<8x8xf32>
    %cst_22 = arith.constant dense<0xFF800000> : vector<8xf32>
    %70 = vector.multi_reduction <maximumf>, %69, %cst_22 [1] : vector<8x8xf32> to vector<8xf32>
    %71 = vector.shape_cast %70 : vector<8xf32> to vector<8x1xf32>
    %72 = vector.broadcast %71 : vector<8x1xf32> to vector<8x8xf32>
    %73 = arith.subf %69, %72 : vector<8x8xf32>
    %74 = math.exp %73 : vector<8x8xf32>
    %cst_23 = arith.constant dense<0.000000e+00> : vector<8xf32>
    %75 = vector.multi_reduction <add>, %74, %cst_23 [1] : vector<8x8xf32> to vector<8xf32>
    %76 = vector.shape_cast %75 : vector<8xf32> to vector<8x1xf32>
    %77 = tpu.reciprocal %76 {approx = true} : vector<8x1xf32> -> vector<8x1xf32>
    %78 = vector.broadcast %77 : vector<8x1xf32> to vector<8x8xf32>
    %79 = arith.mulf %74, %78 : vector<8x8xf32>
    %80 = arith.truncf %79 : vector<8x8xf32> to vector<8x8xbf16>
    %81 = vector.extract_strided_slice %4 {offsets = [0, 64], sizes = [8, 32], strides = [1, 1]} : vector<8x128xbf16> to vector<8x32xbf16>
    %cst_24 = arith.constant dense<0.000000e+00> : vector<8x32xf32>
    %82 = tpu.matmul %80, %81, %cst_24 {dimension_numbers = #tpu.dot_dimension_numbers<[1], [0], [0], [1], [0, 0, 1, 1], [], []>} : vector<8x8xbf16>, vector<8x32xbf16>, vector<8x32xf32> -> vector<8x32xf32>
    %83 = vector.extract_strided_slice %8 {offsets = [0, 3], sizes = [8, 1], strides = [1, 1]} : vector<8x4xf32> to vector<8x1xf32>
    %84 = vector.extract_strided_slice %7 {offsets = [3, 0], sizes = [1, 8], strides = [1, 1]} : vector<4x8xf32> to vector<1x8xf32>
    %85 = vector.broadcast %83 : vector<8x1xf32> to vector<8x8xf32>
    %86 = vector.broadcast %84 : vector<1x8xf32> to vector<8x8xf32>
    %87 = arith.addf %85, %86 : vector<8x8xf32>
    %cst_25 = arith.constant 0.000000e+00 : f32
    %88 = vector.broadcast %cst_25 : f32 to vector<8x8xf32>
    %89 = arith.cmpf ogt, %87, %88 : vector<8x8xf32>
    %cst_26 = arith.constant 2.000000e-01 : f32
    %90 = vector.broadcast %cst_26 : f32 to vector<8x8xf32>
    %91 = arith.mulf %90, %87 : vector<8x8xf32>
    %92 = arith.select %89, %87, %91 : vector<8x8xi1>, vector<8x8xf32>
    %93 = arith.addf %92, %10 : vector<8x8xf32>
    %cst_27 = arith.constant dense<0xFF800000> : vector<8xf32>
    %94 = vector.multi_reduction <maximumf>, %93, %cst_27 [1] : vector<8x8xf32> to vector<8xf32>
    %95 = vector.shape_cast %94 : vector<8xf32> to vector<8x1xf32>
    %96 = vector.broadcast %95 : vector<8x1xf32> to vector<8x8xf32>
    %97 = arith.subf %93, %96 : vector<8x8xf32>
    %98 = math.exp %97 : vector<8x8xf32>
    %cst_28 = arith.constant dense<0.000000e+00> : vector<8xf32>
    %99 = vector.multi_reduction <add>, %98, %cst_28 [1] : vector<8x8xf32> to vector<8xf32>
    %100 = vector.shape_cast %99 : vector<8xf32> to vector<8x1xf32>
    %101 = tpu.reciprocal %100 {approx = true} : vector<8x1xf32> -> vector<8x1xf32>
    %102 = vector.broadcast %101 : vector<8x1xf32> to vector<8x8xf32>
    %103 = arith.mulf %98, %102 : vector<8x8xf32>
    %104 = arith.truncf %103 : vector<8x8xf32> to vector<8x8xbf16>
    %105 = vector.extract_strided_slice %4 {offsets = [0, 96], sizes = [8, 32], strides = [1, 1]} : vector<8x128xbf16> to vector<8x32xbf16>
    %cst_29 = arith.constant dense<0.000000e+00> : vector<8x32xf32>
    %106 = tpu.matmul %104, %105, %cst_29 {dimension_numbers = #tpu.dot_dimension_numbers<[1], [0], [0], [1], [0, 0, 1, 1], [], []>} : vector<8x8xbf16>, vector<8x32xbf16>, vector<8x32xf32> -> vector<8x32xf32>
    %107 = tpu.concatenate %34, %58, %82, %106 in 1 : vector<8x32xf32>, vector<8x32xf32>, vector<8x32xf32>, vector<8x32xf32> -> vector<8x128xf32>
    %108 = arith.addf %107, %9 : vector<8x128xf32>
    %c0_30 = arith.constant 0 : index
    %c0_31 = arith.constant 0 : index
    %109 = vector.load %arg6[%c0_30, %c0_31] : memref<1x128xf32, #tpu.memory_space<vmem>>, vector<1x128xf32>
    %110 = vector.broadcast %109 : vector<1x128xf32> to vector<8x128xf32>
    %111 = arith.addf %108, %110 : vector<8x128xf32>
    %cst_32 = arith.constant 0.000000e+00 : f32
    %112 = vector.broadcast %cst_32 : f32 to vector<8x128xf32>
    %113 = arith.cmpf ogt, %111, %112 : vector<8x128xf32>
    %cst_33 = arith.constant 0.000000e+00 : f32
    %114 = vector.broadcast %cst_33 : f32 to vector<8x128xf32>
    %115 = arith.minimumf %111, %114 : vector<8x128xf32>
    %116 = math.exp %115 : vector<8x128xf32>
    %cst_34 = arith.constant 1.000000e+00 : f32
    %117 = vector.broadcast %cst_34 : f32 to vector<8x128xf32>
    %118 = arith.subf %116, %117 : vector<8x128xf32>
    %119 = arith.select %113, %111, %118 : vector<8x128xi1>, vector<8x128xf32>
    %c0_35 = arith.constant 0 : index
    %c0_36 = arith.constant 0 : index
    %120 = vector.load %arg7[%c0_35, %c0_36] : memref<8x128xf32, #tpu.memory_space<vmem>>, vector<8x128xf32>
    tpu.vector_store %arg7[%c0_35, %c0_36], %119 {strides = array<i32>} : memref<8x128xf32, #tpu.memory_space<vmem>>, vector<8x128xf32>,
    return
  }
  func.func @transform_0(%arg0: i32) -> (i32, i32) {
    %c0_i32 = arith.constant 0 : i32
    %c0_i32_0 = arith.constant 0 : i32
    %c0_i32_1 = arith.constant 0 : i32
    return %c0_i32, %c0_i32_0 : i32, i32
  }
  func.func @transform_1(%arg0: i32) -> (i32, i32) {
    %c0_i32 = arith.constant 0 : i32
    %c0_i32_0 = arith.constant 0 : i32
    %c0_i32_1 = arith.constant 0 : i32
    return %c0_i32, %c0_i32_0 : i32, i32
  }
  func.func @transform_2(%arg0: i32) -> (i32, i32) {
    %c0_i32 = arith.constant 0 : i32
    %c0_i32_0 = arith.constant 0 : i32
    return %arg0, %c0_i32 : i32, i32
  }
  func.func @transform_3(%arg0: i32) -> (i32, i32) {
    %c0_i32 = arith.constant 0 : i32
    %c0_i32_0 = arith.constant 0 : i32
    %c0_i32_1 = arith.constant 0 : i32
    return %c0_i32, %c0_i32_0 : i32, i32
  }
  func.func @transform_4(%arg0: i32) -> (i32, i32) {
    %c0_i32 = arith.constant 0 : i32
    %c0_i32_0 = arith.constant 0 : i32
    %c0_i32_1 = arith.constant 0 : i32
    return %c0_i32, %c0_i32_0 : i32, i32
  }
  func.func @transform_5(%arg0: i32) -> (i32, i32) {
    %c0_i32 = arith.constant 0 : i32
    %c0_i32_0 = arith.constant 0 : i32
    %c0_i32_1 = arith.constant 0 : i32
    return %c0_i32, %c0_i32_0 : i32, i32
  }
  func.func @transform_6(%arg0: i32) -> (i32, i32) {
    %c0_i32 = arith.constant 0 : i32
    %c0_i32_0 = arith.constant 0 : i32
    return %arg0, %c0_i32 : i32, i32
  }
}

</mosaic_0001>

<bundles_post_ra>
// kernel: gat_layer_imp1.1
= control target key start
LH: loop header
LB: loop body
LE: loop exit
PB: predicated region body
PF: predicated region fallthrough
CT: control target
= control target key end

     0   :  { %v650_v0 = vmov 0.0   ;;  %vm651_vm0 = vmmov 0   ;;  %vm46_vm1 = vcmask 130048   ;;  %v652_v5 = vmov 0   ;;  %s783_s0 = inlined_call_operand.vmem [shape: bf16[8,16], index: 0, kind: input, shape index: {}]   ;;  %s784_s1 = inlined_call_operand.vmem [shape: bf16[16,8], index: 1, kind: input, shape index: {}]   ;;  %s785_s2 = inlined_call_operand.vmem [shape: f32[8,8], index: 2, kind: input, shape index: {}]   ;;  %s786_s3 = inlined_call_operand.vmem [shape: bf16[16,260], index: 3, kind: input, shape index: {}]   ;;  %s787_s4 = inlined_call_operand.vmem [shape: bf16[4,16], index: 4, kind: input, shape index: {}]   ;;  %s788_s5 = inlined_call_operand.vmem [shape: f32[1,128], index: 5, kind: input, shape index: {}]   ;;  %s789_s6 = inlined_call_operand.hbm [shape: f32[8,128], index: 6, kind: output, shape index: {}]  }
   0x1   :  { %552 = vmatprep.subr.bf16.mxu1 %v650_v0  ;;  %v603_v1 = vld [vmem:[%s786_s3 + $0x8] ss:$12 sps:$4 sm:$0xff]   ;;  %554 = vmatprep.mubr.msk.bf16.mxu1 %vm651_vm0, %v650_v0  ;;  %v25_v2 = vld [vmem:[%s783_s0] sm:$0xf]  ;;  %v604_v3 = vld [vmem:[%s786_s3 + $0x4] ss:$12 sps:$4 sm:$0xff]  }
   0x2   :  { %v606_v4 = vld [vmem:[%s786_s3] ss:$12 sps:$4 sm:$0xff]   ;;  %553 = vmatpush3.bf16.msra.mxu1 %v603_v1  ;;  %82 = vmatprep.mubr.bf16.mxu0 %v652_v5  ;;  %v653_v6 = vmov 2  }
   0x3   :  { %50 = vmatprep.subr.bf16.mxu0 %v604_v3  ;;  %600 = vset.pattern.permute.xlu1 %v653_v6 }
   0x4   :  { %11 = vsyncpa [#allocation3], 0  ;;  %51 = vmatpush1.bf16.msra.mxu0 %v606_v4  ;;  %v607_v7 = vld [vmem:[%s784_s1] sm:$0xff]   ;;  %598 = vset.pattern.permute.xlu0 %v652_v5  ;;  %vm215_vm2 = vcmask 1043456   ;;  %v654_v17 = vmov 3   ;;  %v655_v18 = vmov 1   ;;  %v190_v25 = vlaneseq }
   0x5   :  { %555 = vmatmul.mubr.msk.bf16.vlgmr.msra.gmra.mrb[0].mxu1 %vm46_vm1, %v25_v2  ;;  %558 = vmatprep.subr.bf16.mxu0 %v650_v0  ;;  %v132_v8 = vld [vmem:[%s787_s4] sm:$0x3]  ;;  %vm199_vm4 = vcmask 64512   ;;  %s657_s7 = smov 96   ;;  %s658_s8 = smov 32   ;;  %vm491_vm8 = vcmask 261120  }
   0x6   :  { %564 = vmatprep.subr.bf16.mxu1 %v650_v0  ;;  %566 = vmatprep.mubr.msk.bf16.mxu1 %vm651_vm0, %v650_v0  ;;  %v191_v26 = vshrl.u32 %v190_v25, 7  ;;  %v184_v40 = vld [vmem:[%s785_s2] sm:$0xff]  ;;  %s656_s2 = smov 64   ;;  %vm493_vm9 = vcmask 523264   ;;  %vm495_vm10 = vcmask 785408   ;;  %s659_s11 = smov [#allocation2]  }
   0x7   :  { %530 = vmatmul.mubr.msk.bf16.vlgmr.msra.gmra.mrb[0].mxu0 %vm46_vm1, %v25_v2  ;;  %s519_s12 = sshll.u32 %s659_s11, 4  ;;  %s520_s12 = int_to_ptr.vmem [resolvable:$true] %s519_s12 }
   0x8   :  { %559 = vmatpush3.bf16.msra.mxu0 %v607_v7  ;;  %560 = vmatprep.mubr.msk.bf16.mxu0 %vm651_vm0, %v650_v0  ;;  %v192_v27 = vsub.s32 0, %v191_v26  ;;  %v339_v28 = vsub.s32 2, %v191_v26  ;;  %v412_v31 = vsub.s32 3, %v191_v26  ;;  %v265_v32 = vsub.s32 1, %v191_v26  ;;  %s626_s13 = scalar_lea.vmem %s520_s12, 128  ;;  %p631_p1 = scmp.lt.s32.totalorder %s520_s12, %s520_s12 }
   0x9   :  { %570 = vmatprep.subr.bf16.mxu0 %v650_v0  ;;  %p627_p0 = scmp.ne.s32.totalorder %s520_s12, %s626_s13  ;;  %p632_p2 = scmp.lt.s32.totalorder %s626_s13, %s626_s13 }
   0xb   :  { %p633_p3 = por %p632_p2, %p631_p1 }
   0xd   :  { %p634_p4 = pnand %p633_p3, %p627_p0 }
   0xf   :  { %561 = vmatmul.mubr.msk.bf16.vlgmr.msra.gmra.mrb[4].mxu0 %vm46_vm1, %v132_v8 }
  0x10   :  { %572 = vmatprep.mubr.msk.bf16.mxu0 %vm651_vm0, %v650_v0 }
  0xd8   :  { %v125_v9 = vpop.f32.mrb[0].mxu1 }
  0xd9   :  { %334 = vperm.xlu1 %600, %v125_v9   ;;  %187 = vperm.xlu0 %598, %v125_v9   ;;  %v556_v10 = vpop.f32.mrb[1].mxu1 }
  0xda   :  { %v128_v11 = vpop.f32.mrb[2].mxu1  ;;  %v84_v12 = vpop.f32.mrb[0].mxu0 }
  0xdb   :  { %v557_v13 = vpop.f32.mrb[3].mxu1  ;;  %v728_v14 = vpack.c.bf16 %v84_v12, %v84_v12  ;;  %v730_v15 = vpop.f32.mrb[1].mxu0 }
  0xdc   :  { %v88_v16 = vpop.f32.mrb[2].mxu0 }
  0xdd   :  { %601 = vset.pattern.permute.xlu1 %v654_v17  ;;  %599 = vset.pattern.permute.xlu0 %v655_v18  ;;  %v89_v19 = vpop.f32.mrb[3].mxu0  ;;  %v217_v20 = vsel %vm215_vm2, %v728_v14, 0 }
  0xde   :  { %407 = vperm.xlu1 %601, %v125_v9   ;;  %260 = vperm.xlu0 %599, %v125_v9  }
  0xdf   :  { %565 = vmatpush3.bf16.msra.mxu1 %v217_v20 }
  0xe0   :  { %576 = vmatprep.subr.bf16.mxu1 %v650_v0 }
  0xe2   :  { %v178_v21 = vpop.f32.mrb[4].mxu0  ;;  %602 = vset.pattern.permute.xlu0 %v654_v17 }
  0xe3   :  { %v562_v22 = vpop.f32.mrb[5].mxu0  ;;  %v193_v29 = vrot.slane %v178_v21, %v192_v27  ;;  %v340_v30 = vrot.slane %v178_v21, %v339_v28  ;;  %v413_v37 = vrot.slane %v178_v21, %v412_v31  ;;  %v266_v38 = vrot.slane %v178_v21, %v265_v32 }
  0xe4   :  { %v181_v23 = vpop.f32.mrb[6].mxu0 }
  0xe5   :  { %v563_v24 = vpop.f32.mrb[7].mxu0 }
 0x158   :  { %v335_v33 = vpop.permute.xlu1 %334  ;;  %v188_v34 = vpop.permute.xlu0 %187 }
 0x159   :  { %v194_v35 = vadd.f32 %v193_v29, %v188_v34  ;;  %v341_v36 = vadd.f32 %v340_v30, %v335_v33 }
 0x15b   :  { %vm195_vm3 = vcmp.gt.f32.partialorder %v194_v35, 0.0  ;;  %v196_v39 = vmul.f32 0.2, %v194_v35  ;;  %v343_v44 = vmul.f32 0.2, %v341_v36  ;;  %vm342_vm5 = vcmp.gt.f32.partialorder %v341_v36, 0.0 }
 0x15d   :  { %v408_v41 = vpop.permute.xlu1 %407  ;;  %v261_v42 = vpop.permute.xlu0 %260  ;;  %v197_v43 = vsel %vm195_vm3, %v194_v35, %v196_v39  ;;  %v344_v53 = vsel %vm342_vm5, %v341_v36, %v343_v44 }
 0x15e   :  { %v414_v45 = vadd.f32 %v413_v37, %v408_v41  ;;  %v267_v46 = vadd.f32 %v266_v38, %v261_v42  ;;  %v198_v47 = vadd.f32 %v197_v43, %v184_v40  ;;  %v345_v58 = vadd.f32 %v344_v53, %v184_v40 }
 0x160   :  { %vm415_vm6 = vcmp.gt.f32.partialorder %v414_v45, 0.0  ;;  %v416_v48 = vmul.f32 0.2, %v414_v45  ;;  %vm268_vm7 = vcmp.gt.f32.partialorder %v267_v46, 0.0  ;;  %v269_v49 = vmul.f32 0.2, %v267_v46 }
 0x161   :  { %v200_v50 = vsel %vm199_vm4, %v198_v47, -inf  ;;  %v346_v59 = vsel %vm199_vm4, %v345_v58, -inf }
 0x162   :  { %201 = vmax.xlane.f32.xlu1 %v200_v50  ;;  %v270_v51 = vsel %vm268_vm7, %v267_v46, %v269_v49  ;;  %v417_v52 = vsel %vm415_vm6, %v414_v45, %v416_v48 }
 0x163   :  { %v271_v54 = vadd.f32 %v270_v51, %v184_v40  ;;  %v418_v55 = vadd.f32 %v417_v52, %v184_v40 }
 0x165   :  { %v272_v56 = vsel %vm199_vm4, %v271_v54, -inf  ;;  %v419_v57 = vsel %vm199_vm4, %v418_v55, -inf }
 0x166   :  { %273 = vmax.xlane.f32.xlu0 %v272_v56  ;;  %420 = vmax.xlane.f32.xlu1 %v419_v57 }
 0x16a   :  { %347 = vmax.xlane.f32.xlu0 %v346_v59 }
 0x1ef   :  { %v202_v60 = vpop.xlane.xlu1 %201 }
 0x1f0   :  { %v203_v61 = vsub.f32 %v198_v47, %v202_v60  ;;  %v538_v60 = vld [vmem:[%s788_s5] ss:$0 sm:$0xff] }
 0x1f2   :  { %v204_v62 = vmul.f32 1.442695, %v203_v61 }
 0x1f3   :  { %v274_v63 = vpop.xlane.xlu0 %273  ;;  %v421_v12 = vpop.xlane.xlu1 %420 }
 0x1f4   :  { %608 = vpow2.f32 %v204_v62  ;;  %v275_v1 = vsub.f32 %v271_v54, %v274_v63  ;;  %v422_v13 = vsub.f32 %v418_v55, %v421_v12 }
 0x1f6   :  { %v276_v2 = vmul.f32 1.442695, %v275_v1  ;;  %v423_v16 = vmul.f32 1.442695, %v422_v13 }
 0x1f7   :  { %v348_v3 = vpop.xlane.xlu0 %347 }
 0x1f8   :  { %610 = vpow2.f32 %v276_v2  ;;  %v349_v4 = vsub.f32 %v345_v58, %v348_v3 }
 0x1fa   :  { %v350_v5 = vmul.f32 1.442695, %v349_v4 }
 0x1fc   :  { %612 = vpow2.f32 %v350_v5 }
 0x1fd   :  { %614 = vpow2.f32 %v423_v16 }
 0x1fe   :  { %v609_v6 = vpop.eup %608 }
 0x1ff   :  { %v206_v7 = vsel %vm199_vm4, %v609_v6, 0.0 }
 0x200   :  { %207 = vadd.xlane.f32.xlu0 %v206_v7 }
 0x202   :  { %v611_v8 = vpop.eup %610 }
 0x203   :  { %v278_v9 = vsel %vm199_vm4, %v611_v8, 0.0 }
 0x204   :  { %279 = vadd.xlane.f32.xlu1 %v278_v9 }
 0x206   :  { %v613_v10 = vpop.eup %612 }
 0x207   :  { %v352_v11 = vsel %vm199_vm4, %v613_v10, 0.0  ;;  %v615_v17 = vpop.eup %614 }
 0x208   :  { %353 = vadd.xlane.f32.xlu0 %v352_v11  ;;  %v425_v18 = vsel %vm199_vm4, %v615_v17, 0.0 }
 0x215   :  { %358 = vrot.lane.b32.xlu1 %v728_v14, %s656_s2 }
 0x21e   :  { %285 = vrot.lane.b32.xlu0 %v728_v14, %s657_s7 }
 0x239   :  { %426 = vadd.xlane.f32.xlu1 %v425_v18 }
 0x24a   :  { %431 = vrot.lane.b32.xlu1 %v728_v14, %s658_s8 }
 0x28d   :  { %v208_v19 = vpop.xlane.xlu0 %207 }
 0x28e   :  { %616 = vrcp.f32 %v208_v19 }
 0x291   :  { %v280_v20 = vpop.xlane.xlu1 %279 }
 0x292   :  { %618 = vrcp.f32 %v280_v20 }
 0x295   :  { %v354_v21 = vpop.xlane.xlu0 %353  ;;  %v359_v25 = vpop.permute.xlu1 %358 }
 0x296   :  { %620 = vrcp.f32 %v354_v21  ;;  %v364_v14 = vsel %vm215_vm2, %v359_v25, 0 }
 0x298   :  { %v617_v22 = vpop.eup %616 }
 0x299   :  { %v210_v23 = vmul.f32 %v617_v22, %v609_v6  ;;  %v286_v24 = vpop.permute.xlu0 %285 }
 0x29a   :  { %v291_v26 = vsel %vm215_vm2, %v286_v24, 0 }
 0x29b   :  { %571 = vmatpush3.bf16.msra.mxu0 %v291_v26  ;;  %v211_v27 = vpack.c.bf16 %v210_v23, %v210_v23 }
 0x29c   :  { %v619_v28 = vpop.eup %618  ;;  %582 = vmatprep.subr.bf16.mxu0 %v650_v0 }
 0x29d   :  { %v282_v29 = vmul.f32 %v619_v28, %v611_v8  ;;  %567 = vmatmul.mubr.msk.bf16.vlgmr.msra.gmra.mrb[4].mxu1 %vm199_vm4, %v211_v27 }
 0x29e   :  { %577 = vmatpush3.bf16.msra.mxu1 %v364_v14  ;;  %578 = vmatprep.mubr.msk.bf16.mxu1 %vm651_vm0, %v650_v0 }
 0x29f   :  { %v283_v30 = vpack.c.bf16 %v282_v29, %v282_v29 }
 0x2a0   :  { %v621_v31 = vpop.eup %620 }
 0x2a1   :  { %v356_v32 = vmul.f32 %v621_v31, %v613_v10  ;;  %573 = vmatmul.mubr.msk.bf16.vlgmr.msra.gmra.mrb[8].mxu0 %vm199_vm4, %v283_v30 }
 0x2a2   :  { %584 = vmatprep.mubr.msk.bf16.mxu0 %vm651_vm0, %v650_v0 }
 0x2a3   :  { %v357_v33 = vpack.c.bf16 %v356_v32, %v356_v32 }
 0x2a5   :  { %579 = vmatmul.mubr.msk.bf16.vlgmr.msra.gmra.mrb[8].mxu1 %vm199_vm4, %v357_v33 }
 0x2c6   :  { %v427_v34 = vpop.xlane.xlu1 %426 }
 0x2c7   :  { %622 = vrcp.f32 %v427_v34 }
 0x2ca   :  { %v432_v35 = vpop.permute.xlu1 %431 }
 0x2cb   :  { %v437_v36 = vsel %vm215_vm2, %v432_v35, 0 }
 0x2cc   :  { %583 = vmatpush3.bf16.msra.mxu0 %v437_v36 }
 0x2d1   :  { %v623_v37 = vpop.eup %622 }
 0x2d2   :  { %v429_v38 = vmul.f32 %v623_v37, %v615_v17 }
 0x2d4   :  { %v430_v39 = vpack.c.bf16 %v429_v38, %v429_v38 }
 0x2d6   :  { %585 = vmatmul.mubr.msk.bf16.vlgmr.msra.gmra.mrb[12].mxu0 %vm199_vm4, %v430_v39 }
 0x370   :  { %v253_v40 = vpop.f32.mrb[4].mxu1 }
 0x371   :  { %v568_v41 = vpop.f32.mrb[5].mxu1 }
 0x372   :  { %v256_v42 = vpop.f32.mrb[6].mxu1 }
 0x373   :  { %v569_v43 = vpop.f32.mrb[7].mxu1 }
 0x374   :  { %v327_v44 = vpop.f32.mrb[8].mxu0 }
 0x375   :  { %480 = vrot.lane.b32.xlu0 %v327_v44, %s658_s8  ;;  %v574_v0 = vpop.f32.mrb[9].mxu0 }
 0x376   :  { %v330_v45 = vpop.f32.mrb[10].mxu0 }
 0x377   :  { %v575_v46 = vpop.f32.mrb[11].mxu0 }
 0x378   :  { %v400_v47 = vpop.f32.mrb[8].mxu1 }
 0x379   :  { %484 = vrot.lane.b32.xlu1 %v400_v47, %s656_s2  ;;  %v580_v48 = vpop.f32.mrb[9].mxu1 }
 0x37a   :  { %v403_v49 = vpop.f32.mrb[10].mxu1 }
 0x37b   :  { %v581_v50 = vpop.f32.mrb[11].mxu1 }
 0x3a9   :  { %v473_v51 = vpop.f32.mrb[12].mxu0 }
 0x3aa   :  { %488 = vrot.lane.b32.xlu0 %v473_v51, %s657_s7  ;;  %v586_v52 = vpop.f32.mrb[13].mxu0 }
 0x3ab   :  { %v476_v53 = vpop.f32.mrb[14].mxu0 }
 0x3ac   :  { %v587_v54 = vpop.f32.mrb[15].mxu0 }
 0x3e7   :  { %v481_v55 = vpop.permute.xlu0 %480 }
 0x3e8   :  { %v492_v57 = vsel %vm491_vm8, %v253_v40, %v481_v55 }
 0x3eb   :  { %v485_v56 = vpop.permute.xlu1 %484 }
 0x3ec   :  { %v494_v58 = vsel %vm493_vm9, %v492_v57, %v485_v56 }
 0x41c   :  { %v489_v59 = vpop.permute.xlu0 %488 }
 0x41d   :  { %v496_v61 = vsel %vm495_vm10, %v494_v58, %v489_v59 }
 0x41e   :  { %v497_v62 = vadd.f32 %v496_v61, %v730_v15 }
 0x420   :  { %v505_v63 = vadd.f32 %v538_v60, %v497_v62 }
 0x422   :  { %v507_v1 = vmin.f32 %v505_v63, 0.0  ;;  %vm506_vm11 = vcmp.gt.f32.partialorder %v505_v63, 0.0 }
 0x424   :  { %v508_v2 = vmul.f32 1.442695, %v507_v1 }
 0x426   :  { %624 = vpow2.f32 %v508_v2 }
 0x430   :  { %v625_v3 = vpop.eup %624 }
 0x431   :  { %v539_v4 = vadd.f32 -1.0, %v625_v3 }
 0x433   :  { %v511_v5 = vsel %vm506_vm11, %v505_v63, %v539_v4 }
 0x434   :  { %512 = vst [vmem:[#allocation2] sm:$0xff] %v511_v5 }
 0x435   :  { %637 = shalt.err (!%p634_p4)
}
 0x436   :  { %s638_s15 = scalar_lea.hbm %s789_s6, 128 }
 0x437   :  { %p639_p5 = scmp.ne.s32.totalorder %s789_s6, %s638_s15  ;;  %p642_p6 = scmp.lt.u32.totalorder %s638_s15, %s789_s6 }
 0x439   :  { %p644_p7 = pnand %p642_p6, %p639_p5 }
 0x43b   :  { %647 = shalt.err (!%p644_p7)
}
 0x43c   :  { %522 = dma.vmem_to_hbm [thread:$0]  %s520_s12, 128, %s789_s6, [#allocation3]  }
 0x43d   :  { %648 = dma.done.wait [#allocation3], 128  }
 0x43e   :  { %649 = vsyncadd [#allocation3], 4294967168 }
 0x43f   :  { %526 = vsyncpa [#allocation3], 1 }

</bundles_post_ra>
